<compile_context>
chip_gen: v6e
topology: v6e:2x2x1
jax: 0.10.0
libtpu: 0.0.40
codegen_flags: <defaults>
</compile_context>

<pallas_src>
import jax
import jax.numpy as jnp
import numpy as np
from jax import lax
from jax.experimental import pallas as pl
from jax.experimental.pallas import tpu as pltpu


# ----------------------------------------------------------------------------
# Fused SE kernel: Bt batch elements per grid step.
#   x_ref  : (Bt, C, HW)   activation tile                (VMEM)
#   w1_ref : (Cr, C)       fc[0].weight   (lane-dense)
#   b1_ref : (1, Cr)       fc[0].bias
#   w2t_ref: (Cr, C)       fc[2].weight, pre-transposed  (lane-dense)
#   b2_ref : (1, C)        fc[2].bias
#   o_ref  : (Bt, C, HW)
# ----------------------------------------------------------------------------
def _se_kernel(x_ref, w1_ref, b1_ref, w2t_ref, b2_ref, o_ref):
  # Squeeze: global average pool over the spatial (lane) axis -> (Bt, C).
  y = jnp.mean(x_ref[...].astype(jnp.float32), axis=-1)

  # Excitation as two small GEMMs over the batch tile (MXU, f32 accumulate).
  #   h = Y @ W1^T + b1  -> (Bt, Cr)
  h = lax.dot_general(
      y, w1_ref[...],
      dimension_numbers=(((1,), (1,)), ((), ())),
      preferred_element_type=jnp.float32) + b1_ref[...]
  h = jnp.maximum(h, 0.0)                                # ReLU
  #   s = sigmoid(h @ W2^T + b2) -> (Bt, C)
  s = jnp.dot(h, w2t_ref[...],
              preferred_element_type=jnp.float32) + b2_ref[...]
  s = jax.nn.sigmoid(s)

  # Rescale: re-read the activation tile from VMEM (do not hold it live across
  # the excitation chain) and broadcast the per-channel gate over HW.
  o_ref[...] = (x_ref[...].astype(jnp.float32) * s[:, :, None]).astype(o_ref.dtype)


def _pick_bt(batch, per_b_bytes, target_bytes=2 << 20):
  """Largest divisor of `batch` whose tile fits the target and keeps grid >= 2."""
  best = 1
  for d in range(1, batch + 1):
    if batch % d != 0:
      continue
    if d * per_b_bytes > target_bytes:
      continue
    if batch >= 2 and batch // d < 2:
      continue  # keep >= 2 grid steps so both v7x TensorCores get a slice
    best = d
  return best


def se_layer_pallas(x_nchw, params):
  """SELayer forward: x (B, C, H, W) -> (B, C, H, W)."""
  B, C, H, W = x_nchw.shape
  HW = H * W
  Cr = params["w1"].shape[0]
  out_dtype = x_nchw.dtype
  itemsize = jnp.dtype(out_dtype).itemsize

  # Lane-dense layout: last dim = HW for the streamed activation tiles.
  x3 = x_nchw.reshape(B, C, HW)
  w1 = params["w1"].astype(jnp.float32)                  # (Cr, C)  lane-dense
  w2t = params["w2"].T.astype(jnp.float32)               # (Cr, C)  lane-dense
  b1 = params["b1"].reshape(1, Cr).astype(jnp.float32)
  b2 = params["b2"].reshape(1, C).astype(jnp.float32)

  # Batch-block size: ~2 MiB input tiles, grid kept >= 2 when possible.
  per_b_bytes = C * HW * itemsize
  Bt = _pick_bt(B, per_b_bytes)
  grid = (B // Bt,)
  tile_bytes = Bt * per_b_bytes

  # Explicit scoped-VMEM budget: double-buffered in + out tiles plus weights,
  # clamped to stay friendly on v5e (16 MiB default) and v7x (64 MiB physical).
  vmem_limit = int(min(64 << 20, max(32 << 20, 4 * tile_bytes + (4 << 20))))

  cost = pl.CostEstimate(
      flops=2 * B * C * HW + 4 * B * C * Cr,
      transcendentals=B * C,
      bytes_accessed=2 * B * C * HW * itemsize + 2 * Cr * C * 4,
  )

  out3 = pl.pallas_call(
      _se_kernel,
      out_shape=jax.ShapeDtypeStruct((B, C, HW), out_dtype),
      grid=grid,
      in_specs=[
          pl.BlockSpec((Bt, C, HW), lambda b: (b, 0, 0)),     # activation tile
          pl.BlockSpec((Cr, C), lambda b: (0, 0)),            # w1   (resident)
          pl.BlockSpec((1, Cr), lambda b: (0, 0)),            # b1
          pl.BlockSpec((Cr, C), lambda b: (0, 0)),            # w2^T (resident)
          pl.BlockSpec((1, C), lambda b: (0, 0)),             # b2
      ],
      out_specs=pl.BlockSpec((Bt, C, HW), lambda b: (b, 0, 0)),
      compiler_params=pltpu.CompilerParams(
          dimension_semantics=("parallel",),
          vmem_limit_bytes=vmem_limit),
      cost_estimate=cost,
  )(x3, w1, b1, w2t, b2)

  return out3.reshape(B, C, H, W)


se_layer_forward = jax.jit(se_layer_pallas)


# ----------------------------------------------------------------------------
# Parameters (PyTorch Linear layout: weight (out_features, in_features))
# ----------------------------------------------------------------------------
def init_se_params(key, channel, reduction=16):
  cr = channel // reduction
  k1, k2, k3, k4 = jax.random.split(key, 4)
  return {
      "w1": (1.0 / jnp.sqrt(channel)) *
            jax.random.normal(k1, (cr, channel), jnp.float32),
      "b1": 0.1 * jax.random.normal(k2, (cr,), jnp.float32),
      "w2": (1.0 / jnp.sqrt(cr)) *
            jax.random.normal(k3, (channel, cr), jnp.float32),
      "b2": 0.1 * jax.random.normal(k4, (channel,), jnp.float32),
  }


# ----------------------------------------------------------------------------
# Pure-JAX reference (mirrors the PyTorch SELayer forward exactly)
# ----------------------------------------------------------------------------
def se_layer_reference(x_nchw, params):
  y = jnp.mean(x_nchw.astype(jnp.float32), axis=(2, 3))  # (B, C) avg pool
  h = jnp.maximum(y @ params["w1"].T + params["b1"], 0.0)
  s = jax.nn.sigmoid(h @ params["w2"].T + params["b2"])  # (B, C)
  return (x_nchw.astype(jnp.float32) * s[:, :, None, None]).astype(x_nchw.dtype)


# ----------------------------------------------------------------------------
if __name__ == "__main__":
  key = jax.random.PRNGKey(0)
  k_x, k_p = jax.random.split(key)

  # channel=128 keeps channel // reduction = 8 (module default reduction=16)
  # and gives lane-dense (C, H*W) = (128, 256) tiles per batch element.
  B, C, H, W = 2, 128, 16, 16
  x = jax.random.normal(k_x, (B, C, H, W), jnp.float32)  # NCHW, like PyTorch
  params = init_se_params(k_p, channel=C, reduction=16)

  out = jax.block_until_ready(se_layer_forward(x, params))
  ref = jax.block_until_ready(se_layer_reference(x, params))

  assert out.shape == (B, C, H, W), out.shape
  assert out.dtype == x.dtype, out.dtype
  np.testing.assert_allclose(np.asarray(out), np.asarray(ref),
                             rtol=1e-4, atol=1e-4)
  print("KERNEL_OK")
</pallas_src>

<mosaic_0001>
module attributes {stable_mosaic.version = 11 : i64} {
  func.func @_se_kernel(%arg0: i32, %arg1: memref<1x128x256xf32, #tpu.memory_space<vmem>>, %arg2: memref<8x128xf32, #tpu.memory_space<vmem>>, %arg3: memref<1x8xf32, #tpu.memory_space<vmem>>, %arg4: memref<8x128xf32, #tpu.memory_space<vmem>>, %arg5: memref<1x128xf32, #tpu.memory_space<vmem>>, %arg6: memref<1x128x256xf32, #tpu.memory_space<vmem>>) attributes {dimension_semantics = [#tpu.dimension_semantics<parallel>], iteration_bounds = array<i64: 2>, scalar_prefetch = 0 : i64, scratch_operands = 0 : i64, tpu.core_type = #tpu.core_type<tc>, window_params = [{transform_indices = @transform_0, window_bounds = array<i64: 1, 128, 256>}, {pipeline_mode = #tpu.pipeline_mode<synchronous>, transform_indices = @transform_1, window_bounds = array<i64: 8, 128>}, {pipeline_mode = #tpu.pipeline_mode<synchronous>, transform_indices = @transform_2, window_bounds = array<i64: 1, 8>}, {pipeline_mode = #tpu.pipeline_mode<synchronous>, transform_indices = @transform_3, window_bounds = array<i64: 8, 128>}, {pipeline_mode = #tpu.pipeline_mode<synchronous>, transform_indices = @transform_4, window_bounds = array<i64: 1, 128>}, {transform_indices = @transform_5, window_bounds = array<i64: 1, 128, 256>}]} {
    %c0 = arith.constant 0 : index
    %c0_0 = arith.constant 0 : index
    %c0_1 = arith.constant 0 : index
    %0 = vector.load %arg1[%c0, %c0_0, %c0_1] : memref<1x128x256xf32, #tpu.memory_space<vmem>>, vector<1x128x256xf32>
    %cst = arith.constant dense<0.000000e+00> : vector<1x128xf32>
    %1 = vector.multi_reduction <add>, %0, %cst [2] : vector<1x128x256xf32> to vector<1x128xf32>
    %cst_2 = arith.constant 2.560000e+02 : f32
    %2 = vector.broadcast %cst_2 : f32 to vector<1x128xf32>
    %3 = arith.divf %1, %2 : vector<1x128xf32>
    %c0_3 = arith.constant 0 : index
    %c0_4 = arith.constant 0 : index
    %4 = vector.load %arg2[%c0_3, %c0_4] : memref<8x128xf32, #tpu.memory_space<vmem>>, vector<8x128xf32>
    %cst_5 = arith.constant dense<0.000000e+00> : vector<1x8xf32>
    %5 = tpu.matmul %3, %4, %cst_5 {dimension_numbers = #tpu.dot_dimension_numbers<[1], [1], [0], [0], [0, 0, 1, 0], [], []>} : vector<1x128xf32>, vector<8x128xf32>, vector<1x8xf32> -> vector<1x8xf32>
    %c0_6 = arith.constant 0 : index
    %c0_7 = arith.constant 0 : index
    %6 = vector.load %arg3[%c0_6, %c0_7] : memref<1x8xf32, #tpu.memory_space<vmem>>, vector<1x8xf32>
    %7 = arith.addf %5, %6 : vector<1x8xf32>
    %cst_8 = arith.constant 0.000000e+00 : f32
    %8 = vector.broadcast %cst_8 : f32 to vector<1x8xf32>
    %9 = arith.maximumf %7, %8 : vector<1x8xf32>
    %c0_9 = arith.constant 0 : index
    %c0_10 = arith.constant 0 : index
    %10 = vector.load %arg4[%c0_9, %c0_10] : memref<8x128xf32, #tpu.memory_space<vmem>>, vector<8x128xf32>
    %cst_11 = arith.constant dense<0.000000e+00> : vector<1x128xf32>
    %11 = tpu.matmul %9, %10, %cst_11 {dimension_numbers = #tpu.dot_dimension_numbers<[1], [0], [0], [1], [0, 0, 1, 1], [], []>} : vector<1x8xf32>, vector<8x128xf32>, vector<1x128xf32> -> vector<1x128xf32>
    %c0_12 = arith.constant 0 : index
    %c0_13 = arith.constant 0 : index
    %12 = vector.load %arg5[%c0_12, %c0_13] : memref<1x128xf32, #tpu.memory_space<vmem>>, vector<1x128xf32>
    %13 = arith.addf %11, %12 : vector<1x128xf32>
    %14 = arith.negf %13 : vector<1x128xf32>
    %15 = math.exp %14 : vector<1x128xf32>
    %cst_14 = arith.constant 1.000000e+00 : f32
    %16 = vector.broadcast %cst_14 : f32 to vector<1x128xf32>
    %17 = arith.addf %16, %15 : vector<1x128xf32>
    %18 = arith.divf %16, %17 : vector<1x128xf32>
    %c0_15 = arith.constant 0 : index
    %c0_16 = arith.constant 0 : index
    %c0_17 = arith.constant 0 : index
    %19 = vector.load %arg1[%c0_15, %c0_16, %c0_17] : memref<1x128x256xf32, #tpu.memory_space<vmem>>, vector<1x128x256xf32>
    %20 = vector.shape_cast %18 : vector<1x128xf32> to vector<1x128x1xf32>
    %21 = vector.broadcast %20 : vector<1x128x1xf32> to vector<1x128x256xf32>
    %22 = arith.mulf %19, %21 : vector<1x128x256xf32>
    %c0_18 = arith.constant 0 : index
    %c0_19 = arith.constant 0 : index
    %c0_20 = arith.constant 0 : index
    %23 = vector.load %arg6[%c0_18, %c0_19, %c0_20] : memref<1x128x256xf32, #tpu.memory_space<vmem>>, vector<1x128x256xf32>
    tpu.vector_store %arg6[%c0_18, %c0_19, %c0_20], %22 {strides = array<i32>} : memref<1x128x256xf32, #tpu.memory_space<vmem>>, vector<1x128x256xf32>,
    return
  }
  func.func @transform_0(%arg0: i32) -> (i32, i32, i32) {
    %c0_i32 = arith.constant 0 : i32
    %c0_i32_0 = arith.constant 0 : i32
    %c0_i32_1 = arith.constant 0 : i32
    return %arg0, %c0_i32, %c0_i32_0 : i32, i32, i32
  }
  func.func @transform_1(%arg0: i32) -> (i32, i32) {
    %c0_i32 = arith.constant 0 : i32
    %c0_i32_0 = arith.constant 0 : i32
    %c0_i32_1 = arith.constant 0 : i32
    return %c0_i32, %c0_i32_0 : i32, i32
  }
  func.func @transform_2(%arg0: i32) -> (i32, i32) {
    %c0_i32 = arith.constant 0 : i32
    %c0_i32_0 = arith.constant 0 : i32
    %c0_i32_1 = arith.constant 0 : i32
    return %c0_i32, %c0_i32_0 : i32, i32
  }
  func.func @transform_3(%arg0: i32) -> (i32, i32) {
    %c0_i32 = arith.constant 0 : i32
    %c0_i32_0 = arith.constant 0 : i32
    %c0_i32_1 = arith.constant 0 : i32
    return %c0_i32, %c0_i32_0 : i32, i32
  }
  func.func @transform_4(%arg0: i32) -> (i32, i32) {
    %c0_i32 = arith.constant 0 : i32
    %c0_i32_0 = arith.constant 0 : i32
    %c0_i32_1 = arith.constant 0 : i32
    return %c0_i32, %c0_i32_0 : i32, i32
  }
  func.func @transform_5(%arg0: i32) -> (i32, i32, i32) {
    %c0_i32 = arith.constant 0 : i32
    %c0_i32_0 = arith.constant 0 : i32
    %c0_i32_1 = arith.constant 0 : i32
    return %arg0, %c0_i32, %c0_i32_0 : i32, i32, i32
  }
}

</mosaic_0001>

<bundles_post_ra>
// kernel: se_layer_pallas.1
= control target key start
LH: loop header
LB: loop body
LE: loop exit
PB: predicated region body
PF: predicated region fallthrough
CT: control target
= control target key end

     0   :  { %s874_s18 = smov 0   ;;  %s1144_s0 = inlined_call_operand.vmem [shape: f32[2,128,256], index: 0, kind: input, shape index: {}]   ;;  %s1145_s1 = inlined_call_operand.vmem [shape: f32[8,128], index: 1, kind: input, shape index: {}]   ;;  %s1146_s2 = inlined_call_operand.vmem [shape: f32[1,8], index: 2, kind: input, shape index: {}]   ;;  %s1147_s3 = inlined_call_operand.vmem [shape: f32[8,128], index: 3, kind: input, shape index: {}]   ;;  %s1148_s4 = inlined_call_operand.vmem [shape: f32[1,128], index: 4, kind: input, shape index: {}]   ;;  %s1149_s5 = inlined_call_operand.vmem [shape: f32[2,128,256], index: 5, kind: output, shape index: {}]  }
   0x1 LB: > { %s791_s19 = sadd.s32 4294967295, %s840_s18   ;;  %p795_p0 = scmp.ge.s32.totalorder %s840_s18, 1  ;;  %s840_s18 = sphi %s874_s18, %s15_s18  }
   0x2   : > { %p187_p1 = scmp.lt.s32.totalorder %s840_s18, 3 }
   0x4   : > { %p188_p2 = pnand %p795_p0, %p187_p1 }
   0x5   : > { %p215_p3 = scmp.lt.s32.totalorder (!%p188_p2), %s791_s19, 1 }
   0x6   : > { %191 = sbr.rel (%p188_p2) target bundleno = 765 (0x2fd), region = 40 }
   0xb   : > { %s1151_s19 = smov (!%p215_p3, %s791_s19), 1  ;;  %v842_v48 = vmov 0.0   ;;  %v322_v49 = vld [vmem:[%s1145_s1] sm:$0xff]  ;;  %vm843_vm0 = vmmov 0   ;;  %v340_v50 = vlaneseq  ;;  %vm351_vm1 = vcmask 130112  }
   0xc   : > { %s804_s20 = sshll.u32 %s1151_s19, 8  ;;  %810 = vmatprep.subr.mxu0 %v842_v48  ;;  %815 = vmatprep.subr.mxu1 %v842_v48  ;;  %vm358_vm2 = vcmask 195712   ;;  %vm365_vm3 = vcmask 261312   ;;  %vm372_vm4 = vcmask 326912   ;;  %vm379_vm5 = vcmask 392512  }
   0xd   : > { %s890_s23 = scalar_lea.vmem %s1144_s0, %s804_s20  ;;  %811 = vmatpush3.xpose.msra.mxu0 %v322_v49  ;;  %812 = vmatprep.mubr.msk.f32.mxu0 %vm843_vm0, %v842_v48  ;;  %v1023_v51 = vand.u32 127, %v340_v50  ;;  %v1025_v52 = vshrl.u32 %v340_v50, 7  ;;  %vm386_vm6 = vcmask 458112   ;;  %vm393_vm7 = vcmask 523712   ;;  %s1075_s9 = scalar_lea.vmem %s1149_s5, %s804_s20 }
   0xe   : > { %v893_v0 = vld [vmem:[%s890_s23] sm:$0xff]  ;;  %v896_v1 = vld [vmem:[%s890_s23 + $0x8] sm:$0xff]  ;;  %v907_v5 = vld [vmem:[%s890_s23 + $0x10] sm:$0xff]  ;;  %817 = vmatprep.mubr.msk.f32.mxu1 %vm843_vm0, %v842_v48  ;;  %vm400_vm8 = vcmask 589312   ;;  %vm407_vm9 = vcmask 654912   ;;  %vm414_vm10 = vcmask 720512  }
   0xf   : > { %v899_v2 = vld [vmem:[%s890_s23 + $0x20] sm:$0xff]  ;;  %v257_v3 = vadd.f32 %v896_v1, %v893_v0  ;;  %v904_v4 = vld [vmem:[%s890_s23 + $0x28] sm:$0xff]  ;;  %v910_v6 = vld [vmem:[%s890_s23 + $0x18] sm:$0xff]  ;;  %v346_v53 = vadd.s32 4294967288, %v1023_v51  ;;  %v353_v55 = vadd.s32 4294967280, %v1023_v51  ;;  %v360_v56 = vadd.s32 4294967272, %v1023_v51 }
  0x10   : > { %v263_v7 = vadd.f32 %v904_v4, %v899_v2  ;;  %v915_v8 = vld [vmem:[%s890_s23 + $0x30] sm:$0xff]  ;;  %v918_v9 = vld [vmem:[%s890_s23 + $0x38] sm:$0xff]  ;;  %v260_v10 = vadd.f32 %v910_v6, %v907_v5  ;;  %v925_v12 = vld [vmem:[%s890_s23 + $0x40] sm:$0xff]  ;;  %v344_v58 = vsub.s32 %v1023_v51, %v1025_v52  ;;  %v367_v61 = vadd.s32 4294967264, %v1023_v51 }
  0x11   : > { %258 = vadd.xlane.f32.xlu0 %v257_v3  ;;  %v266_v11 = vadd.f32 %v918_v9, %v915_v8  ;;  %v928_v13 = vld [vmem:[%s890_s23 + $0x48] sm:$0xff]  ;;  %v931_v14 = vld [vmem:[%s890_s23 + $0x50] sm:$0xff]  ;;  %v934_v15 = vld [vmem:[%s890_s23 + $0x58] sm:$0xff]  ;;  %v349_v60 = vsub.s32 %v346_v53, %v1025_v52  ;;  %v356_v62 = vsub.s32 %v353_v55, %v1025_v52  ;;  %vm421_vm11 = vcmask 786112  }
  0x12   : > { %264 = vadd.xlane.f32.xlu1 %v263_v7  ;;  %v269_v16 = vadd.f32 %v928_v13, %v925_v12  ;;  %v272_v17 = vadd.f32 %v934_v15, %v931_v14  ;;  %v941_v18 = vld [vmem:[%s890_s23 + $0x60] sm:$0xff]  ;;  %v944_v19 = vld [vmem:[%s890_s23 + $0x68] sm:$0xff]  ;;  %v947_v20 = vld [vmem:[%s890_s23 + $0x70] sm:$0xff]  ;;  %v363_v7 = vsub.s32 %v360_v56, %v1025_v52  ;;  %vm428_vm12 = vcmask 851712  }
  0x13   : > { %v950_v21 = vld [vmem:[%s890_s23 + $0x78] sm:$0xff]  ;;  %v275_v22 = vadd.f32 %v944_v19, %v941_v18  ;;  %v957_v24 = vld [vmem:[%s890_s23 + $0x80] sm:$0xff]  ;;  %v960_v25 = vld [vmem:[%s890_s23 + $0x88] sm:$0xff]  ;;  %vm435_vm13 = vcmask 917312   ;;  %vm442_vm14 = vcmask 982912   ;;  %vm449_vm15 = vcmask 1048512  }
  0x14   : > { %v278_v23 = vadd.f32 %v950_v21, %v947_v20  ;;  %v963_v26 = vld [vmem:[%s890_s23 + $0x90] sm:$0xff]  ;;  %v966_v27 = vld [vmem:[%s890_s23 + $0x98] sm:$0xff]  ;;  %v281_v28 = vadd.f32 %v960_v25, %v957_v24  ;;  %v973_v30 = vld [vmem:[%s890_s23 + $0xa0] sm:$0xff]  ;;  %vm525_vm0 = vcmask 64512  }
  0x15   : > { %261 = vadd.xlane.f32.xlu0 %v260_v10  ;;  %v284_v29 = vadd.f32 %v966_v27, %v963_v26  ;;  %v976_v31 = vld [vmem:[%s890_s23 + $0xa8] sm:$0xff]  ;;  %v979_v32 = vld [vmem:[%s890_s23 + $0xb0] sm:$0xff]  ;;  %v982_v33 = vld [vmem:[%s890_s23 + $0xb8] sm:$0xff]  ;;  %v374_v10 = vadd.s32 4294967256, %v1023_v51 }
  0x16   : > { %267 = vadd.xlane.f32.xlu1 %v266_v11  ;;  %v287_v34 = vadd.f32 %v976_v31, %v973_v30  ;;  %v290_v35 = vadd.f32 %v982_v33, %v979_v32  ;;  %v989_v36 = vld [vmem:[%s890_s23 + $0xc0] sm:$0xff]  ;;  %v992_v37 = vld [vmem:[%s890_s23 + $0xc8] sm:$0xff]  ;;  %v995_v38 = vld [vmem:[%s890_s23 + $0xd0] sm:$0xff] }
  0x17   : > { %v998_v39 = vld [vmem:[%s890_s23 + $0xd8] sm:$0xff]  ;;  %v293_v40 = vadd.f32 %v992_v37, %v989_v36  ;;  %v1005_v42 = vld [vmem:[%s890_s23 + $0xe0] sm:$0xff]  ;;  %v1008_v43 = vld [vmem:[%s890_s23 + $0xe8] sm:$0xff] }
  0x18   : > { %v296_v41 = vadd.f32 %v998_v39, %v995_v38  ;;  %v1011_v44 = vld [vmem:[%s890_s23 + $0xf0] sm:$0xff]  ;;  %v1014_v45 = vld [vmem:[%s890_s23 + $0xf8] sm:$0xff]  ;;  %v299_v46 = vadd.f32 %v1008_v43, %v1005_v42 }
  0x19   : > { %270 = vadd.xlane.f32.xlu0 %v269_v16  ;;  %v302_v47 = vadd.f32 %v1014_v45, %v1011_v44 }
  0x1a   : > { %273 = vadd.xlane.f32.xlu1 %v272_v17 }
  0x1d   : > { %276 = vadd.xlane.f32.xlu0 %v275_v22 }
  0x1e   : > { %279 = vadd.xlane.f32.xlu1 %v278_v23 }
  0x21   : > { %282 = vadd.xlane.f32.xlu0 %v281_v28  ;;  %v370_v28 = vsub.s32 %v367_v61, %v1025_v52  ;;  %v402_v61 = vadd.s32 4294967224, %v1023_v51 }
  0x22   : > { %285 = vadd.xlane.f32.xlu1 %v284_v29  ;;  %v381_v29 = vadd.s32 4294967248, %v1023_v51 }
  0x24   : > { %v384_v56 = vsub.s32 %v381_v29, %v1025_v52  ;;  %v416_v29 = vadd.s32 4294967208, %v1023_v51 }
  0x25   : > { %288 = vadd.xlane.f32.xlu0 %v287_v34 }
  0x26   : > { %291 = vadd.xlane.f32.xlu1 %v290_v35 }
  0x29   : > { %294 = vadd.xlane.f32.xlu0 %v293_v40 }
  0x2a   : > { %297 = vadd.xlane.f32.xlu1 %v296_v41  ;;  %v377_v41 = vsub.s32 %v374_v10, %v1025_v52 }
  0x2d   : > { %300 = vadd.xlane.f32.xlu0 %v299_v46  ;;  %v388_v46 = vadd.s32 4294967240, %v1023_v51 }
  0x2e   : > { %303 = vadd.xlane.f32.xlu1 %v302_v47 }
  0x9a   : > { %v259_v54 = vpop.xlane.xlu0 %258 }
  0x9b   : > { %v265_v57 = vpop.xlane.xlu1 %264  ;;  %v306_v59 = vmul.f32 0.00390625, %v259_v54 }
  0x9c   : > { %v308_v63 = vmul.f32 0.00390625, %v265_v57  ;;  %v395_v57 = vadd.s32 4294967232, %v1023_v51 }
  0x9d   : > { %v345_v22 = vrot.slane %v306_v59, %v344_v58 }
  0x9e   : > { %v262_v3 = vpop.xlane.xlu0 %261  ;;  %v357_v34 = vrot.slane %v308_v63, %v356_v62 }
  0x9f   : > { %v307_v11 = vmul.f32 0.00390625, %v262_v3  ;;  %v268_v16 = vpop.xlane.xlu1 %267 }
  0xa0   : > { %v309_v17 = vmul.f32 0.00390625, %v268_v16  ;;  %v409_v16 = vadd.s32 4294967216, %v1023_v51 }
  0xa1   : > { %v350_v23 = vrot.slane %v307_v11, %v349_v60  ;;  %v391_v60 = vsub.s32 %v388_v46, %v1025_v52  ;;  %v398_v11 = vsub.s32 %v395_v57, %v1025_v52 }
  0xa2   : > { %v364_v35 = vrot.slane %v309_v17, %v363_v7  ;;  %v271_v40 = vpop.xlane.xlu0 %270 }
  0xa3   : > { %v352_v47 = vsel %vm351_vm1, %v350_v23, %v345_v22  ;;  %v310_v48 = vmul.f32 0.00390625, %v271_v40  ;;  %v274_v49 = vpop.xlane.xlu1 %273 }
  0xa4   : > { %v359_v50 = vsel %vm358_vm2, %v357_v34, %v352_v47  ;;  %v311_v53 = vmul.f32 0.00390625, %v274_v49  ;;  %v412_v47 = vsub.s32 %v409_v16, %v1025_v52 }
  0xa5   : > { %v366_v54 = vsel %vm365_vm3, %v364_v35, %v359_v50  ;;  %v371_v55 = vrot.slane %v310_v48, %v370_v28  ;;  %v405_v28 = vsub.s32 %v402_v61, %v1025_v52  ;;  %v423_v48 = vadd.s32 4294967200, %v1023_v51 }
  0xa6   : > { %v378_v58 = vrot.slane %v311_v53, %v377_v41  ;;  %v277_v59 = vpop.xlane.xlu0 %276 }
  0xa7   : > { %v373_v62 = vsel %vm372_vm4, %v371_v55, %v366_v54  ;;  %v312_v63 = vmul.f32 0.00390625, %v277_v59  ;;  %v280_v3 = vpop.xlane.xlu1 %279  ;;  %v419_v54 = vsub.s32 %v416_v29, %v1025_v52  ;;  %v430_v55 = vadd.s32 4294967192, %v1023_v51 }
  0xa8   : > { %v313_v7 = vmul.f32 0.00390625, %v280_v3  ;;  %v380_v17 = vsel %vm379_vm5, %v378_v58, %v373_v62  ;;  %v426_v61 = vsub.s32 %v423_v48, %v1025_v52  ;;  %v437_v62 = vadd.s32 4294967184, %v1023_v51 }
  0xa9   : > { %v385_v10 = vrot.slane %v312_v63, %v384_v56 }
  0xaa   : > { %v392_v22 = vrot.slane %v313_v7, %v391_v60  ;;  %v283_v23 = vpop.xlane.xlu0 %282  ;;  %v440_v29 = vsub.s32 %v437_v62, %v1025_v52  ;;  %v524_v62 = vld [vmem:[%s1148_s4] sm:$0x1] }
  0xab   : > { %v387_v34 = vsel %vm386_vm6, %v385_v10, %v380_v17  ;;  %v314_v35 = vmul.f32 0.00390625, %v283_v23  ;;  %v286_v40 = vpop.xlane.xlu1 %285  ;;  %v433_v10 = vsub.s32 %v430_v55, %v1025_v52 }
  0xac   : > { %v315_v41 = vmul.f32 0.00390625, %v286_v40  ;;  %v394_v49 = vsel %vm393_vm7, %v392_v22, %v387_v34 }
  0xad   : > { %v399_v46 = vrot.slane %v314_v35, %v398_v11  ;;  %v444_v11 = vadd.s32 4294967176, %v1023_v51 }
  0xae   : > { %v406_v50 = vrot.slane %v315_v41, %v405_v28  ;;  %v289_v53 = vpop.xlane.xlu0 %288 }
  0xaf   : > { %v401_v56 = vsel %vm400_vm8, %v399_v46, %v394_v49  ;;  %v316_v57 = vmul.f32 0.00390625, %v289_v53  ;;  %v292_v58 = vpop.xlane.xlu1 %291  ;;  %v447_v41 = vsub.s32 %v444_v11, %v1025_v52 }
  0xb0   : > { %v317_v59 = vmul.f32 0.00390625, %v292_v58  ;;  %v408_v63 = vsel %vm407_vm9, %v406_v50, %v401_v56  ;;  %v523_v56 = vld [vmem:[%s1147_s3] sm:$0xff] }
  0xb1   : > { %v413_v60 = vrot.slane %v316_v57, %v412_v47  ;;  %816 = vmatpush3.msra.mxu1 %v523_v56  ;;  %v323_v57 = vld [vmem:[%s1146_s2] sm:$0x1] }
  0xb2   : > { %v420_v3 = vrot.slane %v317_v59, %v419_v54  ;;  %v295_v7 = vpop.xlane.xlu0 %294 }
  0xb3   : > { %v415_v16 = vsel %vm414_vm10, %v413_v60, %v408_v63  ;;  %v318_v17 = vmul.f32 0.00390625, %v295_v7  ;;  %v298_v22 = vpop.xlane.xlu1 %297 }
  0xb4   : > { %v319_v23 = vmul.f32 0.00390625, %v298_v22  ;;  %v422_v34 = vsel %vm421_vm11, %v420_v3, %v415_v16 }
  0xb5   : > { %v427_v28 = vrot.slane %v318_v17, %v426_v61  ;;  %v607_v17 = vsub.s32 0, %v1025_v52 }
  0xb6   : > { %v434_v35 = vrot.slane %v319_v23, %v433_v10  ;;  %v301_v40 = vpop.xlane.xlu0 %300 }
  0xb7   : > { %v429_v46 = vsel %vm428_vm12, %v427_v28, %v422_v34  ;;  %v320_v47 = vmul.f32 0.00390625, %v301_v40  ;;  %v304_v48 = vpop.xlane.xlu1 %303 }
  0xb8   : > { %v321_v49 = vmul.f32 0.00390625, %v304_v48  ;;  %v436_v53 = vsel %vm435_vm13, %v434_v35, %v429_v46 }
  0xb9   : > { %v441_v51 = vrot.slane %v320_v47, %v440_v29 }
  0xba   : > { %v448_v50 = vrot.slane %v321_v49, %v447_v41 }
  0xbb   : > { %v443_v54 = vsel %vm442_vm14, %v441_v51, %v436_v53 }
  0xbc   : > { %v450_v55 = vsel %vm449_vm15, %v448_v50, %v443_v54 }
  0xbd   : > { %813 = vmatmul.mubr.f32.vlgmr.msra.gmra.mxu0 %v450_v55 }
 0x17d   : > { %v518_v58 = vpop.f32.mrf.mxu0 }
 0x17e   : > { %v519_v59 = vadd.f32 %v518_v58, %v323_v57 }
 0x17f   : > { %v814_v60 = vpop.f32.mrf.mxu0 }
 0x180   : > { %v522_v61 = vmax.f32 %v519_v59, 0.0 }
 0x182   : > { %818 = vmatmul.mubr.msk.f32.vlgmr.msra.gmra.mxu1 %vm525_vm0, %v522_v61 }
 0x242   : > { %v595_v63 = vpop.f32.mrf.mxu1 }
 0x243   : > { %v596_v3 = vadd.f32 %v595_v63, %v524_v62 }
 0x244   : > { %v819_v7 = vpop.f32.mrf.mxu1 }
 0x245   : > { %v801_v10 = vmul.f32 -1.442695, %v596_v3 }
 0x247   : > { %830 = vpow2.f32 %v801_v10 }
 0x254   : > { %v831_v11 = vpop.eup %830 }
 0x255   : > { %v602_v16 = vadd.f32 1.0, %v831_v11 }
 0x257   : > { %832 = vrcp.f32 %v602_v16 }
 0x264   : > { %v833_v22 = vpop.eup %832 }
 0x265   : > { %v608_v23 = vrot.slane %v833_v22, %v607_v17 }
 0x267   : > { %614 = vbcast.lane.b32.xlu1 %v608_v23, 264  ;;  %610 = vbcast.lane.b32.xlu0 %v608_v23, 256 }
 0x26b   : > { %618 = vbcast.lane.b32.xlu1 %v608_v23, 272  ;;  %626 = vbcast.lane.b32.xlu0 %v608_v23, 288 }
 0x26f   : > { %622 = vbcast.lane.b32.xlu1 %v608_v23, 280  ;;  %634 = vbcast.lane.b32.xlu0 %v608_v23, 304 }
 0x273   : > { %630 = vbcast.lane.b32.xlu1 %v608_v23, 296  ;;  %642 = vbcast.lane.b32.xlu0 %v608_v23, 320 }
 0x277   : > { %638 = vbcast.lane.b32.xlu1 %v608_v23, 312  ;;  %650 = vbcast.lane.b32.xlu0 %v608_v23, 336 }
 0x27b   : > { %646 = vbcast.lane.b32.xlu1 %v608_v23, 328  ;;  %658 = vbcast.lane.b32.xlu0 %v608_v23, 352 }
 0x27f   : > { %654 = vbcast.lane.b32.xlu1 %v608_v23, 344  ;;  %666 = vbcast.lane.b32.xlu0 %v608_v23, 368 }
 0x283   : > { %662 = vbcast.lane.b32.xlu1 %v608_v23, 360 }
 0x287   : > { %670 = vbcast.lane.b32.xlu1 %v608_v23, 376 }
 0x2d9   : > { %v615_v52 = vpop.permute.xlu1 %614  ;;  %v611_v28 = vpop.permute.xlu0 %610 }
 0x2da   : > { %v674_v29 = vmul.f32 %v615_v52, %v907_v5  ;;  %v675_v34 = vmul.f32 %v615_v52, %v910_v6  ;;  %v672_v35 = vmul.f32 %v611_v28, %v893_v0  ;;  %v673_v40 = vmul.f32 %v611_v28, %v896_v1 }
 0x2dc   : > { %706 = vst [vmem:[%s1075_s9 + $0x10] sm:$0xff] %v674_v29  ;;  %707 = vst [vmem:[%s1075_s9 + $0x18] sm:$0xff] %v675_v34 }
 0x2dd   : > { %704 = vst [vmem:[%s1075_s9] sm:$0xff] %v672_v35  ;;  %705 = vst [vmem:[%s1075_s9 + $0x8] sm:$0xff] %v673_v40  ;;  %v619_v41 = vpop.permute.xlu1 %618  ;;  %v627_v46 = vpop.permute.xlu0 %626 }
 0x2de   : > { %v676_v47 = vmul.f32 %v619_v41, %v899_v2  ;;  %v677_v5 = vmul.f32 %v619_v41, %v904_v4  ;;  %v680_v6 = vmul.f32 %v627_v46, %v925_v12  ;;  %v681_v0 = vmul.f32 %v627_v46, %v928_v13 }
 0x2e0   : > { %708 = vst [vmem:[%s1075_s9 + $0x20] sm:$0xff] %v676_v47  ;;  %709 = vst [vmem:[%s1075_s9 + $0x28] sm:$0xff] %v677_v5 }
 0x2e1   : > { %712 = vst [vmem:[%s1075_s9 + $0x40] sm:$0xff] %v680_v6  ;;  %713 = vst [vmem:[%s1075_s9 + $0x48] sm:$0xff] %v681_v0  ;;  %v623_v1 = vpop.permute.xlu1 %622  ;;  %v635_v48 = vpop.permute.xlu0 %634 }
 0x2e2   : > { %v678_v49 = vmul.f32 %v623_v1, %v915_v8  ;;  %v679_v2 = vmul.f32 %v623_v1, %v918_v9  ;;  %v684_v4 = vmul.f32 %v635_v48, %v941_v18  ;;  %v685_v12 = vmul.f32 %v635_v48, %v944_v19 }
 0x2e4   : > { %710 = vst [vmem:[%s1075_s9 + $0x30] sm:$0xff] %v678_v49  ;;  %711 = vst [vmem:[%s1075_s9 + $0x38] sm:$0xff] %v679_v2 }
 0x2e5   : > { %716 = vst [vmem:[%s1075_s9 + $0x60] sm:$0xff] %v684_v4  ;;  %717 = vst [vmem:[%s1075_s9 + $0x68] sm:$0xff] %v685_v12  ;;  %v631_v13 = vpop.permute.xlu1 %630  ;;  %v643_v51 = vpop.permute.xlu0 %642 }
 0x2e6   : > { %v682_v50 = vmul.f32 %v631_v13, %v931_v14  ;;  %v683_v8 = vmul.f32 %v631_v13, %v934_v15  ;;  %v688_v9 = vmul.f32 %v643_v51, %v957_v24  ;;  %v689_v18 = vmul.f32 %v643_v51, %v960_v25 }
 0x2e8   : > { %714 = vst [vmem:[%s1075_s9 + $0x50] sm:$0xff] %v682_v50  ;;  %715 = vst [vmem:[%s1075_s9 + $0x58] sm:$0xff] %v683_v8 }
 0x2e9   : > { %720 = vst [vmem:[%s1075_s9 + $0x80] sm:$0xff] %v688_v9  ;;  %721 = vst [vmem:[%s1075_s9 + $0x88] sm:$0xff] %v689_v18  ;;  %v639_v19 = vpop.permute.xlu1 %638  ;;  %v651_v53 = vpop.permute.xlu0 %650 }
 0x2ea   : > { %v686_v54 = vmul.f32 %v639_v19, %v947_v20  ;;  %v687_v14 = vmul.f32 %v639_v19, %v950_v21  ;;  %v692_v15 = vmul.f32 %v651_v53, %v973_v30  ;;  %v693_v24 = vmul.f32 %v651_v53, %v976_v31 }
 0x2ec   : > { %718 = vst [vmem:[%s1075_s9 + $0x70] sm:$0xff] %v686_v54  ;;  %719 = vst [vmem:[%s1075_s9 + $0x78] sm:$0xff] %v687_v14 }
 0x2ed   : > { %724 = vst [vmem:[%s1075_s9 + $0xa0] sm:$0xff] %v692_v15  ;;  %725 = vst [vmem:[%s1075_s9 + $0xa8] sm:$0xff] %v693_v24  ;;  %v647_v25 = vpop.permute.xlu1 %646  ;;  %v659_v55 = vpop.permute.xlu0 %658 }
 0x2ee   : > { %v690_v56 = vmul.f32 %v647_v25, %v963_v26  ;;  %v691_v20 = vmul.f32 %v647_v25, %v966_v27  ;;  %v696_v21 = vmul.f32 %v659_v55, %v989_v36  ;;  %v697_v30 = vmul.f32 %v659_v55, %v992_v37 }
 0x2f0   : > { %722 = vst [vmem:[%s1075_s9 + $0x90] sm:$0xff] %v690_v56  ;;  %723 = vst [vmem:[%s1075_s9 + $0x98] sm:$0xff] %v691_v20 }
 0x2f1   : > { %728 = vst [vmem:[%s1075_s9 + $0xc0] sm:$0xff] %v696_v21  ;;  %729 = vst [vmem:[%s1075_s9 + $0xc8] sm:$0xff] %v697_v30  ;;  %v655_v31 = vpop.permute.xlu1 %654  ;;  %v667_v57 = vpop.permute.xlu0 %666 }
 0x2f2   : > { %v694_v58 = vmul.f32 %v655_v31, %v979_v32  ;;  %v695_v26 = vmul.f32 %v655_v31, %v982_v33  ;;  %v700_v27 = vmul.f32 %v667_v57, %v1005_v42  ;;  %v701_v36 = vmul.f32 %v667_v57, %v1008_v43 }
 0x2f4   : > { %726 = vst [vmem:[%s1075_s9 + $0xb0] sm:$0xff] %v694_v58  ;;  %727 = vst [vmem:[%s1075_s9 + $0xb8] sm:$0xff] %v695_v26 }
 0x2f5   : > { %732 = vst [vmem:[%s1075_s9 + $0xe0] sm:$0xff] %v700_v27  ;;  %733 = vst [vmem:[%s1075_s9 + $0xe8] sm:$0xff] %v701_v36  ;;  %v663_v37 = vpop.permute.xlu1 %662 }
 0x2f6   : > { %v698_v59 = vmul.f32 %v663_v37, %v995_v38  ;;  %v699_v60 = vmul.f32 %v663_v37, %v998_v39 }
 0x2f8   : > { %730 = vst [vmem:[%s1075_s9 + $0xd0] sm:$0xff] %v698_v59  ;;  %731 = vst [vmem:[%s1075_s9 + $0xd8] sm:$0xff] %v699_v60 }
 0x2f9   : > { %v671_v32 = vpop.permute.xlu1 %670 }
 0x2fa   : > { %v702_v61 = vmul.f32 %v671_v32, %v1011_v44  ;;  %v703_v33 = vmul.f32 %v671_v32, %v1014_v45 }
 0x2fc   : > { %734 = vst [vmem:[%s1075_s9 + $0xf0] sm:$0xff] %v702_v61  ;;  %735 = vst [vmem:[%s1075_s9 + $0xf8] sm:$0xff] %v703_v33 }
 0x2fd PF: > { %s15_s18 = sadd.s32 1, %s840_s18  }
 0x2fe   : > { %p12_p4 = scmp.ge.s32.totalorder %s15_s18, 4  }
 0x300   :  { %14 = sbr.rel (!%p12_p4) target bundleno = 1 (0x1), region = 70 }

</bundles_post_ra>
